<compile_context>
chip_gen: v7x
topology: tpu7x:2x2x1
jax: 0.10.0
libtpu: 0.0.40
codegen_flags: <defaults>
</compile_context>

<pallas_src>
import functools

import jax
import jax.numpy as jnp
from jax.experimental import pallas as pl
from jax.experimental.pallas import tpu as pltpu

EPS = 1e-6


# ----------------------------------------------------------------------------
# helpers
# ----------------------------------------------------------------------------
def _round_up(x, m):
    return ((x + m - 1) // m) * m


def _round_down(x, m):
    return (x // m) * m


def _int_pow(x, n):
    """x**n for a static positive integer n, using only VPU multiplies."""
    assert n >= 1
    result = None
    base = x
    while n > 0:
        if n & 1:
            result = base if result is None else result * base
        n >>= 1
        if n:
            base = base * base
    return result


def _choose_tile_rows(nc, hw, itemsize):
    """Row tile sized for ~2 MiB of input per grid step.

    Measured tiled-streaming data shows ~85% of HBM roofline already at this
    size; bigger tiles only add VMEM pressure (f32 intermediates are
    tile-sized) and pipeline fill/drain.  Rows are a multiple of 8 (sublane),
    or the full row count when NC < 8 so the block equals the array dim.
    """
    if nc < 8:
        return nc
    hw_lanes = _round_up(hw, 128)           # lane-padded width in VMEM
    target_bytes = 2 * 1024 * 1024
    rows = _round_down(target_bytes // (hw_lanes * itemsize), 8)
    rows = max(8, rows)
    # Never make a single block larger than the (8-rounded-down) array: the
    # ragged tail is handled by Pallas, so there is no need to over-tile.
    rows = min(rows, max(8, _round_down(nc, 8)))
    return rows


# ----------------------------------------------------------------------------
# kernels: write the p-th-power mean; the 1/p root is applied in the wrapper.
# ----------------------------------------------------------------------------
def _gem_pow_mean_static_p(x_ref, o_ref, *, p_int, inv_hw):
    # Fast path: p is a compile-time small integer (module default p=3).
    # clamp(min=eps) then x^p via repeated VPU multiplies (no EUP work).
    x = x_ref[...].astype(jnp.float32)
    xc = jnp.maximum(x, EPS)
    xp = _int_pow(xc, p_int)
    o_ref[...] = jnp.sum(xp, axis=-1, keepdims=True) * inv_hw


def _gem_pow_mean_traced_p(p_ref, x_ref, o_ref, *, inv_hw):
    # Fallback: p is a traced scalar (SMEM).  x^p = exp(p*log(x)), safe since
    # x >= eps > 0 after the clamp.  EUP-bound — avoid in production by
    # passing p_value= (static) to the wrapper.
    p = p_ref[0]
    x = x_ref[...].astype(jnp.float32)
    xc = jnp.maximum(x, EPS)
    xp = jnp.exp(p * jnp.log(xc))
    o_ref[...] = jnp.sum(xp, axis=-1, keepdims=True) * inv_hw


# ----------------------------------------------------------------------------
# wrapper
# ----------------------------------------------------------------------------
def gem_pallas(x, p, eps=EPS, p_value=None):
    """GeM pooling: x is NCHW (N, C, H, W); returns (N, C, 1, 1).

    `p_value` (optional Python float) pins the exponent statically so the
    int-pow fast path is used even under jit (and avoids a per-call
    device->host readback of the parameter).
    """
    assert eps == EPS  # eps is baked into the kernels as a constant
    N, C, H, W = x.shape
    NC, HW = N * C, H * W
    x2d = x.reshape(NC, HW)
    itemsize = jnp.dtype(x.dtype).itemsize

    tile_rows = _choose_tile_rows(NC, HW, itemsize)
    grid = (pl.cdiv(NC, tile_rows),)          # ragged last block: no padding
    inv_hw = 1.0 / float(HW)

    # VMEM budget: 2x double-buffered input tile + ~4 tile-sized f32
    # intermediates (astype / clamp / pow / sum staging) + slack.  Capped
    # below v7x's 64 MiB physical VMEM; with ~2 MiB tiles this is small.
    hw_lanes = _round_up(HW, 128)
    tile_in_bytes = tile_rows * hw_lanes * itemsize
    tile_f32_bytes = tile_rows * hw_lanes * 4
    vmem_need = 2 * tile_in_bytes + 4 * tile_f32_bytes + (1 << 20)
    vmem_limit = int(min(max(32 << 20, vmem_need), 56 << 20))

    compiler_params = pltpu.CompilerParams(
        dimension_semantics=("parallel",),
        vmem_limit_bytes=vmem_limit,
    )
    x_spec = pl.BlockSpec((tile_rows, HW), lambda i: (i, 0))
    out_spec = pl.BlockSpec((tile_rows, 1), lambda i: (i, 0))
    out_shape = jax.ShapeDtypeStruct((NC, 1), jnp.float32)
    bytes_accessed = NC * HW * itemsize + NC * 4

    # Resolve a static exponent if possible (p_value wins; otherwise read the
    # concrete weight once — note this readback syncs in eager mode, so prefer
    # p_value= in latency-sensitive call sites).
    p_static = None
    if p_value is not None:
        p_static = float(p_value)
    else:
        try:
            p_static = float(jnp.asarray(p).reshape(-1)[0])
        except Exception:  # traced under jit -> SMEM fallback path
            p_static = None

    if (p_static is not None
            and abs(p_static - round(p_static)) < 1e-6
            and 1 <= round(p_static) <= 16):
        # -------- fast path: static small-integer exponent --------
        p_int = int(round(p_static))
        kern = functools.partial(_gem_pow_mean_static_p,
                                 p_int=p_int, inv_hw=inv_hw)
        pow_mean = pl.pallas_call(
            kern,
            out_shape=out_shape,
            grid=grid,
            in_specs=[x_spec],
            out_specs=out_spec,
            compiler_params=compiler_params,
            cost_estimate=pl.CostEstimate(
                flops=NC * HW * 4, transcendentals=0,
                bytes_accessed=bytes_accessed),
        )(x2d)
        # 1/p root on the tiny (NC, 1) result, outside the kernel.
        out2d = pow_mean ** (1.0 / p_static)
    else:
        # -------- fallback: traced exponent via SMEM scalar --------
        p_scalar = jnp.asarray(p, dtype=jnp.float32).reshape(-1)[0]
        p_arr = p_scalar.reshape(1)
        kern = functools.partial(_gem_pow_mean_traced_p, inv_hw=inv_hw)
        pow_mean = pl.pallas_call(
            kern,
            out_shape=out_shape,
            grid=grid,
            in_specs=[
                pl.BlockSpec(memory_space=pltpu.MemorySpace.SMEM),  # p scalar
                x_spec,
            ],
            out_specs=out_spec,
            compiler_params=compiler_params,
            cost_estimate=pl.CostEstimate(
                flops=NC * HW * 3, transcendentals=2 * NC * HW,
                bytes_accessed=bytes_accessed),
        )(p_arr, x2d)
        out2d = pow_mean ** (1.0 / p_scalar)

    return out2d.astype(x.dtype).reshape(N, C, 1, 1)


if __name__ == "__main__":
    key = jax.random.PRNGKey(0)
    # Module __init__: p = Parameter(ones(1) * 3) -> deterministic p = 3.0
    p_param = jnp.ones((1,), dtype=jnp.float32) * 3.0
    x = jax.random.normal(key, (2, 4, 16, 16), dtype=jnp.float32)

    # 1) Eager, concrete p -> static int-pow fast path.
    out_fast = jax.block_until_ready(gem_pallas(x, p_param))

    # 2) jit with the exponent pinned statically (recommended production use)
    #    -> fast path, no transcendentals, no per-call host readback.
    gem_jit_static = jax.jit(functools.partial(gem_pallas, p_value=3.0))
    out_jit_static = jax.block_until_ready(gem_jit_static(x, p_param))

    # 3) jit with a traced p -> SMEM-scalar exp/log fallback path.
    out_jit_traced = jax.block_until_ready(jax.jit(gem_pallas)(x, p_param))

    # Reference (plain JAX) mirroring the PyTorch semantics.
    p = p_param[0]
    ref = jnp.mean(jnp.maximum(x, EPS) ** p, axis=(2, 3),
                   keepdims=True) ** (1.0 / p)

    assert out_fast.shape == (2, 4, 1, 1)
    assert out_jit_static.shape == (2, 4, 1, 1)
    assert out_jit_traced.shape == (2, 4, 1, 1)
    assert jnp.allclose(out_fast, ref, rtol=1e-4, atol=1e-5)
    assert jnp.allclose(out_jit_static, ref, rtol=1e-4, atol=1e-5)
    assert jnp.allclose(out_jit_traced, ref, rtol=1e-4, atol=1e-5)

    print("KERNEL_OK")
</pallas_src>

<mosaic_0001>
module attributes {stable_mosaic.version = 11 : i64} {
  func.func @_gem_pow_mean_static_p(%arg0: i32, %arg1: memref<8x256xf32, #tpu.memory_space<vmem>>, %arg2: memref<8x1xf32, #tpu.memory_space<vmem>>) attributes {dimension_semantics = [#tpu.dimension_semantics<parallel>], iteration_bounds = array<i64: 1>, scalar_prefetch = 0 : i64, scratch_operands = 0 : i64, tpu.core_type = #tpu.core_type<tc>, window_params = [{transform_indices = @transform_0, window_bounds = array<i64: 8, 256>}, {transform_indices = @transform_1, window_bounds = array<i64: 8, 1>}]} {
    %c0 = arith.constant 0 : index
    %c0_0 = arith.constant 0 : index
    %0 = vector.load %arg1[%c0, %c0_0] : memref<8x256xf32, #tpu.memory_space<vmem>>, vector<8x256xf32>
    %cst = arith.constant 9.99999997E-7 : f32
    %1 = vector.broadcast %cst : f32 to vector<8x256xf32>
    %2 = arith.maximumf %0, %1 : vector<8x256xf32>
    %3 = arith.mulf %2, %2 : vector<8x256xf32>
    %4 = arith.mulf %2, %3 : vector<8x256xf32>
    %cst_1 = arith.constant dense<0.000000e+00> : vector<8xf32>
    %5 = vector.multi_reduction <add>, %4, %cst_1 [1] : vector<8x256xf32> to vector<8xf32>
    %6 = vector.shape_cast %5 : vector<8xf32> to vector<8x1xf32>
    %cst_2 = arith.constant 3.906250e-03 : f32
    %7 = vector.broadcast %cst_2 : f32 to vector<8x1xf32>
    %8 = arith.mulf %6, %7 : vector<8x1xf32>
    %c0_3 = arith.constant 0 : index
    %c0_4 = arith.constant 0 : index
    %9 = vector.load %arg2[%c0_3, %c0_4] : memref<8x1xf32, #tpu.memory_space<vmem>>, vector<8x1xf32>
    tpu.vector_store %arg2[%c0_3, %c0_4], %8 {strides = array<i32>} : memref<8x1xf32, #tpu.memory_space<vmem>>, vector<8x1xf32>,
    return
  }
  func.func @transform_0(%arg0: i32) -> (i32, i32) {
    %c0_i32 = arith.constant 0 : i32
    %c0_i32_0 = arith.constant 0 : i32
    return %arg0, %c0_i32 : i32, i32
  }
  func.func @transform_1(%arg0: i32) -> (i32, i32) {
    %c0_i32 = arith.constant 0 : i32
    %c0_i32_0 = arith.constant 0 : i32
    return %arg0, %c0_i32 : i32, i32
  }
}

</mosaic_0001>

<bundles_post_ra>
// kernel: tpu_custom_call.1
= control target key start
LH: loop header
LB: loop body
LE: loop exit
PB: predicated region body
PF: predicated region fallthrough
CT: control target
= control target key end

     0   :  { %6 = vsyncpa [#allocation3], 0  ;;  %s64_s6 = smov [#allocation2]   ;;  %s90_s0 = inlined_call_operand.hbm [shape: f32[8,256], index: 0, kind: input, shape index: {}]   ;;  %s91_s1 = inlined_call_operand.vmem [shape: f32[8,1], index: 1, kind: output, shape index: {}]  }
   0x1   :  { %s13_s7 = sshll.u32 %s64_s6, 4  ;;  %s40_s10 = scalar_lea.hbm %s90_s0, 256  ;;  %s14_s7 = int_to_ptr.vmem [resolvable:$true] %s13_s7 }
   0x2   :  { %p41_p0 = scmp.ne.s32.totalorder %s90_s0, %s40_s10  ;;  %p44_p1 = scmp.lt.u32.totalorder %s40_s10, %s90_s0 }
   0x4   :  { %p46_p2 = pnand %p44_p1, %p41_p0 }
   0x6   :  { %49 = shalt.err (!%p46_p2)
}
   0x7   :  { %s50_s15 = scalar_lea.vmem %s14_s7, 256  ;;  %p55_p4 = scmp.lt.s32.totalorder %s14_s7, %s14_s7 }
   0x8   :  { %p51_p3 = scmp.ne.s32.totalorder %s14_s7, %s50_s15  ;;  %p56_p5 = scmp.lt.s32.totalorder %s50_s15, %s50_s15 }
   0xa   :  { %p57_p6 = por %p56_p5, %p55_p4 }
   0xc   :  { %p58_p7 = pnand %p57_p6, %p51_p3 }
   0xe   :  { %61 = shalt.err (!%p58_p7)
}
   0xf   :  { %16 = dma.hbm_to_vmem [thread:$0]  %s90_s0, 256, %s14_s7, [#allocation3]  }
  0x10   :  { %62 = dma.done.wait [#allocation3], 256  }
  0x11   :  { %63 = vsyncadd [#allocation3], 4294967040  ;;  %v20_v0 = vld [vmem:[#allocation2] sm:$0xff]  ;;  %v21_v1 = vld [vmem:[#allocation2 + $0x8] sm:$0xff]  ;;  %vm32_vm0 = vcmask 7168  }
  0x12   :  { %v22_v2 = vmax.f32 %v20_v0, 1e-06  ;;  %v23_v3 = vmax.f32 %v21_v1, 1e-06 }
  0x14   :  { %v24_v4 = vmul.f32 %v22_v2, %v22_v2  ;;  %v25_v5 = vmul.f32 %v23_v3, %v23_v3 }
  0x16   :  { %v26_v6 = vmul.f32 %v24_v4, %v22_v2  ;;  %v27_v7 = vmul.f32 %v25_v5, %v23_v3 }
  0x18   :  { %v28_v8 = vadd.f32 %v27_v7, %v26_v6 }
  0x1a   :  { %29 = vadd.xlane.f32.xlu0 %v28_v8 }
  0xa7   :  { %v30_v9 = vpop.xlane.xlu0 %29 }
  0xa8   :  { %v31_v10 = vmul.f32 0.00390625, %v30_v9 }
  0xaa   :  { %33 = vst.msk [vmem:[%s91_s1] sm:$0xff] %vm32_vm0, %v31_v10 }
  0xab   :  { %38 = vsyncpa [#allocation3], 1 }

</bundles_post_ra>
